<compile_context>
chip_gen: v7x
topology: tpu7x:2x2x1
jax: 0.10.0
libtpu: 0.0.40
codegen_flags: <defaults>
</compile_context>

<pallas_src>
import numpy as np
import jax
import jax.numpy as jnp
from jax.experimental import pallas as pl
from jax.experimental.pallas import tpu as pltpu


def _build_pe(max_seq_length: int, d_model: int) -> jnp.ndarray:
    """Vectorized equivalent of the PyTorch double loop:
       even i: sin(pos / 10000**(i/d)),  odd i: cos(pos / 10000**((i-1)/d))."""
    pos = np.arange(max_seq_length, dtype=np.float64)[:, None]   # (S1, 1)
    i = np.arange(d_model, dtype=np.float64)[None, :]            # (1, D)
    ang_even = pos / np.power(10000.0, i / d_model)
    ang_odd = pos / np.power(10000.0, (i - 1.0) / d_model)
    even_mask = (np.arange(d_model) % 2 == 0)[None, :]
    pe = np.where(even_mask, np.sin(ang_even), np.cos(ang_odd)).astype(np.float32)
    return jnp.asarray(pe)[None, :, :]                           # (1, S1, D)


def _pos_enc_kernel(x_ref, row0_ref, pe_rest_ref, out_ref):
    # x_ref:       (Bt, S,   D)  input tokens for this batch tile
    # row0_ref:    (1,  1,   D)  precomputed cls_token + pe[0] (batch-invariant)
    # pe_rest_ref: (1,  S,   D)  pe[1:]
    # out_ref:     (Bt, S+1, D)
    bt, s1, d = out_ref.shape
    s = s1 - 1
    # Body rows: x + pe[1:] broadcast over the batch tile (one VPU add, one store).
    out_ref[:, pl.ds(1, s), :] = (x_ref[...] + pe_rest_ref[...]).astype(out_ref.dtype)
    # Cls row: already cls_token + pe[0]; just broadcast and store.
    out_ref[:, pl.ds(0, 1), :] = jnp.broadcast_to(
        row0_ref[...], (bt, 1, d)).astype(out_ref.dtype)


def _choose_batch_tile(B: int, S: int, D: int, itemsize: int,
                       target_bytes: int = 1 << 20,
                       vmem_budget: int = 24 << 20) -> int:
    """Pick Bt (a divisor of B): smallest tile whose per-step x+out slab reaches
    ~1 MiB, capped so the double-buffered blocks fit a conservative VMEM budget."""
    S1 = S + 1
    per_b = (S + S1) * D * itemsize            # x block + out block bytes per batch elem
    divisors = [d for d in range(1, B + 1) if B % d == 0]
    fits = [d for d in divisors if 2 * d * per_b <= vmem_budget] or [1]
    for d in fits:
        if d * per_b >= target_bytes:
            return d
    return fits[-1]


def positional_encoding(x: jnp.ndarray, cls_token: jnp.ndarray, pe: jnp.ndarray) -> jnp.ndarray:
    B, S, D = x.shape
    S1 = S + 1
    assert pe.shape == (1, S1, D)
    assert cls_token.shape == (1, 1, D)

    out_dtype = jnp.result_type(x.dtype, cls_token.dtype, pe.dtype)

    # Batch-invariant precompute: cls row of the output is cls_token + pe[0].
    row0 = (cls_token.astype(out_dtype) + pe[:, 0:1, :].astype(out_dtype))  # (1, 1, D)
    pe_rest = pe[:, 1:, :]                                                  # (1, S, D)

    itemsize = jnp.dtype(out_dtype).itemsize
    bt = _choose_batch_tile(B, S, D, itemsize)

    # Raise the scoped-VMEM limit only if the double-buffered slabs might
    # exceed the smallest generation default (16 MiB on v5e).
    live_bytes = 2 * bt * (S + S1) * D * itemsize + S1 * D * itemsize
    vmem_limit = int(live_bytes * 2) if live_bytes > (12 << 20) else None

    return pl.pallas_call(
        _pos_enc_kernel,
        out_shape=jax.ShapeDtypeStruct((B, S1, D), out_dtype),
        grid_spec=pltpu.PrefetchScalarGridSpec(
            num_scalar_prefetch=0,
            grid=(B // bt,),
            in_specs=[
                pl.BlockSpec((bt, S, D), lambda b: (b, 0, 0)),    # x: per-batch-tile slice
                pl.BlockSpec((1, 1, D), lambda b: (0, 0, 0)),     # cls + pe[0]: shared
                pl.BlockSpec((1, S, D), lambda b: (0, 0, 0)),     # pe[1:]: shared, resident
            ],
            out_specs=pl.BlockSpec((bt, S1, D), lambda b: (b, 0, 0)),
        ),
        compiler_params=pltpu.CompilerParams(
            dimension_semantics=("parallel",),   # batch axis sharded across TCs on v7x
            vmem_limit_bytes=vmem_limit,
        ),
    )(x, row0, pe_rest)


if __name__ == "__main__":
    # Small shapes consistent with the module's forward:
    #   d_model = 32, input seq = 8, so max_seq_length = 9 (cls token prepended).
    B, S, D = 2, 8, 32
    max_seq_length = S + 1

    key = jax.random.PRNGKey(0)
    k_cls, k_x = jax.random.split(key)

    # Deterministic "parameters" (synthetic, no checkpoint load).
    cls_token = jax.random.normal(k_cls, (1, 1, D), dtype=jnp.float32)  # nn.Parameter(randn(1,1,d_model))
    pe = _build_pe(max_seq_length, D)                                   # registered buffer

    # Sanity check: vectorized PE build matches the original Python double loop.
    pe_loop = np.zeros((max_seq_length, D), dtype=np.float32)
    for pos in range(max_seq_length):
        for i in range(D):
            if i % 2 == 0:
                pe_loop[pos][i] = np.sin(pos / 10000.0 ** (i / D))
            else:
                pe_loop[pos][i] = np.cos(pos / 10000.0 ** ((i - 1) / D))
    np.testing.assert_allclose(np.asarray(pe)[0], pe_loop, rtol=1e-6, atol=1e-6)

    x = jax.random.normal(k_x, (B, S, D), dtype=jnp.float32)

    out = positional_encoding(x, cls_token, pe)
    out = jax.block_until_ready(out)

    # Reference check (plain JAX) to validate semantics.
    ref = jnp.concatenate([jnp.broadcast_to(cls_token, (B, 1, D)), x], axis=1) + pe
    assert out.shape == (B, max_seq_length, D)
    np.testing.assert_allclose(np.asarray(out), np.asarray(ref), rtol=1e-6, atol=1e-6)

    print("KERNEL_OK")
</pallas_src>

<mosaic_0001>
module attributes {stable_mosaic.version = 11 : i64} {
  func.func @_pos_enc_kernel(%arg0: i32, %arg1: memref<2x8x32xf32, #tpu.memory_space<vmem>>, %arg2: memref<1x1x32xf32, #tpu.memory_space<vmem>>, %arg3: memref<1x8x32xf32, #tpu.memory_space<vmem>>, %arg4: memref<2x9x32xf32, #tpu.memory_space<vmem>>) attributes {dimension_semantics = [#tpu.dimension_semantics<parallel>], iteration_bounds = array<i64: 1>, scalar_prefetch = 0 : i64, scratch_operands = 0 : i64, tpu.core_type = #tpu.core_type<tc>, window_params = [{transform_indices = @transform_0, window_bounds = array<i64: 2, 8, 32>}, {pipeline_mode = #tpu.pipeline_mode<synchronous>, transform_indices = @transform_1, window_bounds = array<i64: 1, 1, 32>}, {pipeline_mode = #tpu.pipeline_mode<synchronous>, transform_indices = @transform_2, window_bounds = array<i64: 1, 8, 32>}, {transform_indices = @transform_3, window_bounds = array<i64: 2, 9, 32>}]} {
    %c0 = arith.constant 0 : index
    %c0_0 = arith.constant 0 : index
    %c0_1 = arith.constant 0 : index
    %0 = vector.load %arg1[%c0, %c0_0, %c0_1] : memref<2x8x32xf32, #tpu.memory_space<vmem>>, vector<2x8x32xf32>
    %c0_2 = arith.constant 0 : index
    %c0_3 = arith.constant 0 : index
    %c0_4 = arith.constant 0 : index
    %1 = vector.load %arg3[%c0_2, %c0_3, %c0_4] : memref<1x8x32xf32, #tpu.memory_space<vmem>>, vector<1x8x32xf32>
    %2 = vector.broadcast %1 : vector<1x8x32xf32> to vector<2x8x32xf32>
    %3 = arith.addf %0, %2 : vector<2x8x32xf32>
    %c0_5 = arith.constant 0 : index
    %c1 = arith.constant 1 : index
    %c0_6 = arith.constant 0 : index
    %4 = vector.load %arg4[%c0_5, %c1, %c0_6] : memref<2x9x32xf32, #tpu.memory_space<vmem>>, vector<2x8x32xf32>
    tpu.vector_store %arg4[%c0_5, %c1, %c0_6], %3 {strides = array<i32>} : memref<2x9x32xf32, #tpu.memory_space<vmem>>, vector<2x8x32xf32>,
    %c0_7 = arith.constant 0 : index
    %c0_8 = arith.constant 0 : index
    %c0_9 = arith.constant 0 : index
    %5 = vector.load %arg2[%c0_7, %c0_8, %c0_9] : memref<1x1x32xf32, #tpu.memory_space<vmem>>, vector<1x1x32xf32>
    %6 = vector.shape_cast %5 : vector<1x1x32xf32> to vector<1x1x32xf32>
    %7 = vector.broadcast %6 : vector<1x1x32xf32> to vector<2x1x32xf32>
    %c0_10 = arith.constant 0 : index
    %c0_11 = arith.constant 0 : index
    %c0_12 = arith.constant 0 : index
    %8 = vector.load %arg4[%c0_10, %c0_11, %c0_12] : memref<2x9x32xf32, #tpu.memory_space<vmem>>, vector<2x1x32xf32>
    tpu.vector_store %arg4[%c0_10, %c0_11, %c0_12], %7 {strides = array<i32>} : memref<2x9x32xf32, #tpu.memory_space<vmem>>, vector<2x1x32xf32>,
    return
  }
  func.func @transform_0(%arg0: i32) -> (i32, i32, i32) {
    %c0_i32 = arith.constant 0 : i32
    %c0_i32_0 = arith.constant 0 : i32
    %c0_i32_1 = arith.constant 0 : i32
    return %arg0, %c0_i32, %c0_i32_0 : i32, i32, i32
  }
  func.func @transform_1(%arg0: i32) -> (i32, i32, i32) {
    %c0_i32 = arith.constant 0 : i32
    %c0_i32_0 = arith.constant 0 : i32
    %c0_i32_1 = arith.constant 0 : i32
    %c0_i32_2 = arith.constant 0 : i32
    return %c0_i32, %c0_i32_0, %c0_i32_1 : i32, i32, i32
  }
  func.func @transform_2(%arg0: i32) -> (i32, i32, i32) {
    %c0_i32 = arith.constant 0 : i32
    %c0_i32_0 = arith.constant 0 : i32
    %c0_i32_1 = arith.constant 0 : i32
    %c0_i32_2 = arith.constant 0 : i32
    return %c0_i32, %c0_i32_0, %c0_i32_1 : i32, i32, i32
  }
  func.func @transform_3(%arg0: i32) -> (i32, i32, i32) {
    %c0_i32 = arith.constant 0 : i32
    %c0_i32_0 = arith.constant 0 : i32
    %c0_i32_1 = arith.constant 0 : i32
    return %arg0, %c0_i32, %c0_i32_0 : i32, i32, i32
  }
}

</mosaic_0001>

<bundles_post_ra>
// kernel: tpu_custom_call.1
= control target key start
LH: loop header
LB: loop body
LE: loop exit
PB: predicated region body
PF: predicated region fallthrough
CT: control target
= control target key end

     0   :  { %8 = vsyncpa [#allocation3], 0  ;;  %s173_s0 = inlined_call_operand.hbm [shape: f32[2,8,32], index: 0, kind: input, shape index: {}]   ;;  %s174_s1 = inlined_call_operand.vmem [shape: f32[1,1,32], index: 1, kind: input, shape index: {}]   ;;  %s175_s2 = inlined_call_operand.hbm [shape: f32[1,8,32], index: 2, kind: input, shape index: {}]   ;;  %s176_s3 = inlined_call_operand.vmem [shape: f32[2,9,32], index: 3, kind: output, shape index: {}]  }
   0x1   :  { %9 = vsyncpa [#allocation5], 0  ;;  %s110_s12 = smov [#allocation2]   ;;  %s62_s16 = scalar_lea.hbm %s173_s0, 256 }
   0x2   :  { %s15_s13 = sshll.u32 %s110_s12, 4  ;;  %p63_p0 = scmp.ne.s32.totalorder %s173_s0, %s62_s16  ;;  %s16_s13 = int_to_ptr.vmem [resolvable:$true] %s15_s13 }
   0x3   :  { %p66_p1 = scmp.lt.u32.totalorder %s62_s16, %s173_s0 }
   0x5   :  { %p68_p2 = pnand %p66_p1, %p63_p0 }
   0x7   :  { %71 = shalt.err (!%p68_p2)
}
   0x8   :  { %s72_s21 = scalar_lea.vmem %s16_s13, 256  ;;  %p77_p4 = scmp.lt.s32.totalorder %s16_s13, %s16_s13 }
   0x9   :  { %p73_p3 = scmp.ne.s32.totalorder %s16_s13, %s72_s21  ;;  %p78_p5 = scmp.lt.s32.totalorder %s72_s21, %s72_s21 }
   0xb   :  { %p79_p6 = por %p78_p5, %p77_p4 }
   0xd   :  { %p80_p7 = pnand %p79_p6, %p73_p3 }
   0xf   :  { %83 = shalt.err (!%p80_p7)
}
  0x10   :  { %s111_s22 = smov 128   ;;  %s112_s23 = smov 8  }
  0x11   :  { %21 = dma.hbm_to_vmem [thread:$0]  %s173_s0, 256, %s16_s13, [#allocation3], %s111_s22, %s111_s22, %s112_s23  }
  0x12   :  { %s113_s26 = smov [#allocation4]   ;;  %s84_s30 = scalar_lea.hbm %s175_s2, 128 }
  0x13   :  { %s30_s27 = sshll.u32 %s113_s26, 4  ;;  %p85_p8 = scmp.ne.s32.totalorder %s175_s2, %s84_s30  ;;  %s31_s27 = int_to_ptr.vmem [resolvable:$true] %s30_s27 }
  0x14   :  { %p88_p9 = scmp.lt.u32.totalorder %s84_s30, %s175_s2 }
  0x16   :  { %p90_p10 = pnand %p88_p9, %p85_p8 }
  0x18   :  { %93 = shalt.err (!%p90_p10)
}
  0x19   :  { %s94_s8 = scalar_lea.vmem %s31_s27, 128  ;;  %p99_p12 = scmp.lt.s32.totalorder %s31_s27, %s31_s27 }
  0x1a   :  { %p95_p11 = scmp.ne.s32.totalorder %s31_s27, %s94_s8  ;;  %p100_p13 = scmp.lt.s32.totalorder %s94_s8, %s94_s8 }
  0x1c   :  { %p101_p0 = por %p100_p13, %p99_p12 }
  0x1e   :  { %p102_p1 = pnand %p101_p0, %p95_p11 }
  0x20   :  { %105 = shalt.err (!%p102_p1)
}
  0x21   :  { %33 = dma.hbm_to_vmem [thread:$0]  %s175_s2, 128, %s31_s27, [#allocation5]  }
  0x22   :  { %106 = dma.done.wait [#allocation3], 256  }
  0x23   :  { %107 = vsyncadd [#allocation3], 4294967040 }
  0x24   :  { %108 = dma.done.wait [#allocation5], 128  }
  0x25   :  { %109 = vsyncadd [#allocation5], 4294967168  ;;  %vm49_vm0 = vcmask 253952   ;;  %v40_v0 = vld [vmem:[#allocation2] sm:$0xff]  ;;  %v42_v1 = vld [vmem:[#allocation4] sm:$0xff]  ;;  %vm45_vm1 = vcmask 261120  }
  0x26   :  { %v41_v2 = vld [vmem:[#allocation2 + $0x8] sm:$0xff]  ;;  %v43_v3 = vadd.f32 %v42_v1, %v40_v0  ;;  %v48_v5 = vld [vmem:[%s174_s1] sm:$0x1] }
  0x27   :  { %v44_v4 = vadd.f32 %v42_v1, %v41_v2  ;;  %50 = vst.msk [vmem:[%s176_s3] sm:$0x1] %vm49_vm0, %v48_v5  ;;  %51 = vst.msk [vmem:[%s176_s3 + $0x10] sm:$0x1] %vm49_vm0, %v48_v5 }
  0x28   :  { %46 = vst.msk [vmem:[%s176_s3 + $0x1] sm:$0xff] %vm45_vm1, %v43_v3 }
  0x29   :  { %47 = vst.msk [vmem:[%s176_s3 + $0x11] sm:$0xff] %vm45_vm1, %v44_v4 }
  0x2a   :  { %56 = vsyncpa [#allocation3], 1 }
  0x2b   :  { %57 = vsyncpa [#allocation5], 1 }

</bundles_post_ra>
